<compile_context>
chip_gen: v5e
topology: v5e:2x2
jax: 0.10.0
libtpu: 0.0.40
codegen_flags: <defaults>
</compile_context>

<pallas_src>
import math

import jax
import jax.numpy as jnp
from jax import lax
from jax.experimental import pallas as pl
from jax.experimental.pallas import tpu as pltpu


def _round_up(v, m):
    return ((v + m - 1) // m) * m


def _vmem_cap_bytes():
    """Physical VMEM capacity of the current chip (conservative fallback)."""
    try:
        info = pltpu.get_tpu_info()
        cap = getattr(info, "vmem_capacity_bytes", None)
        if cap:
            return int(cap)
    except Exception:
        pass
    return 64 * 1024 * 1024  # v7x per-TC size: safe lower bound everywhere


def _make_kernel(use_scratch, mxu_dtype):
    """Kernel for one (TB, TN) output tile, accumulated over the K grid axis.

    x_ref  : (TB, TK)  batch rows, K-slice of features
    w_ref  : (TN, TK)  weight tile (output-feature rows, K columns)
    xn_ref : (TB, TN)  batch rows, N-slice of features (diag correction)
    dw_ref : (1,  TN)  diag(W) slice
    b_ref  : (1,  TN)  bias slice
    o_ref  : (TB, TN)  output tile (also the accumulator when f32)
    """

    def kernel(x_ref, w_ref, xn_ref, dw_ref, b_ref, o_ref, *scratch):
        acc_ref = scratch[0] if use_scratch else o_ref
        k = pl.program_id(2)

        @pl.when(k == 0)
        def _():
            acc_ref[...] = jnp.zeros_like(acc_ref)

        a = x_ref[...]
        w = w_ref[...]
        if mxu_dtype is not None:
            a = a.astype(mxu_dtype)
            w = w.astype(mxu_dtype)

        # z[b, n] += sum_k x[b, k] * W[n, k]  -- contract on axis 1 of both
        # operands (MXU-native RHS-transposed contraction, no explicit .T).
        acc_ref[...] += lax.dot_general(
            a,
            w,
            dimension_numbers=(((1,), (1,)), ((), ())),
            preferred_element_type=jnp.float32,
        ).astype(acc_ref.dtype)

        @pl.when(k == pl.num_programs(2) - 1)
        def _():
            # Diagonal masking via subtraction of the diag contribution, plus
            # bias, all in f32 before the final cast (v5e-friendly epilogue).
            out = (
                acc_ref[...].astype(jnp.float32)
                - xn_ref[...].astype(jnp.float32) * dw_ref[...].astype(jnp.float32)
                + b_ref[...].astype(jnp.float32)
            )
            o_ref[...] = out.astype(o_ref.dtype)

    return kernel


def feature_regression(x, W, b, *, tb=512, tn=256, tk=512, mxu_input_dtype=None):
    """z_h = x @ (W * (ones - eye)).T + b, computed as x @ W.T - x*diag(W) + b.

    mxu_input_dtype: optionally cast the matmul inputs (e.g. jnp.bfloat16) for
    v6e/v7x MXU rates; accumulation stays f32. Default None = exact f32 path.
    """
    B, D = x.shape
    assert W.shape == (D, D) and b.shape == (D,)
    out_dtype = x.dtype

    # ---- tile selection (never fall back to a full-D giant weight tile) ----
    B_al = _round_up(B, 8)
    D_al = _round_up(D, 128)
    TB = min(_round_up(tb, 8), B_al)
    TN = min(_round_up(tn, 128), D_al)
    TK = min(_round_up(tk, 128), D_al)

    B_pad = _round_up(B, TB)
    D_pad = _round_up(D, math.lcm(TN, TK))

    # v7x megacore: make sure at least one "parallel" axis has extent >= 2 when
    # alignment allows, so both TensorCores get work (harmless on v5e/v6e).
    if B_pad // TB == 1 and D_pad // TN == 1:
        if TB % 16 == 0:
            TB //= 2
        elif TN % 256 == 0:
            TN //= 2

    grid = (B_pad // TB, D_pad // TN, D_pad // TK)

    # ---- zero-padding (sliced off after the call; zeros are exact no-ops) ----
    pb, pd = B_pad - B, D_pad - D
    x_p = jnp.pad(x, ((0, pb), (0, pd))) if (pb or pd) else x
    W_p = jnp.pad(W, ((0, pd), (0, pd))) if pd else W
    b_p = jnp.pad(b, (0, pd)) if pd else b

    diag_w = jnp.diagonal(W_p).reshape(1, D_pad)  # D-element vector, ~free
    b2d = b_p.reshape(1, D_pad)

    # f32 outputs accumulate directly into the resident output block; only
    # lower-precision outputs need a separate f32 scratch accumulator.
    use_scratch = jnp.dtype(out_dtype) != jnp.dtype(jnp.float32)
    scratch_shapes = [pltpu.VMEM((TB, TN), jnp.float32)] if use_scratch else []

    # ---- per-generation VMEM budget -----------------------------------------
    in_bytes = jnp.dtype(x.dtype).itemsize
    out_bytes = jnp.dtype(out_dtype).itemsize
    est = 2 * (TB * TK + TN * TK + TB * TN) * in_bytes  # x, W, xn (dbl-buffered)
    est += 2 * 2 * TN * in_bytes                        # diag(W), bias
    est += 2 * TB * TN * out_bytes                      # output block
    if use_scratch:
        est += TB * TN * 4
    cap = _vmem_cap_bytes()
    vmem_limit = min(max(32 * 1024 * 1024, 2 * est + (4 << 20)), int(cap * 0.8))
    # TODO(synk): single-buffer the k-invariant xn/diag/bias streams via
    # pipeline_mode=pl.Buffered(1) once verified on all target generations.

    out_padded = pl.pallas_call(
        _make_kernel(use_scratch, mxu_input_dtype),
        out_shape=jax.ShapeDtypeStruct((B_pad, D_pad), out_dtype),
        grid_spec=pltpu.PrefetchScalarGridSpec(
            num_scalar_prefetch=0,
            grid=grid,
            in_specs=[
                pl.BlockSpec((TB, TK), lambda i, j, k: (i, k)),  # x (K view)
                pl.BlockSpec((TN, TK), lambda i, j, k: (j, k)),  # W
                pl.BlockSpec((TB, TN), lambda i, j, k: (i, j)),  # x (N view)
                pl.BlockSpec((1, TN), lambda i, j, k: (0, j)),   # diag(W)
                pl.BlockSpec((1, TN), lambda i, j, k: (0, j)),   # bias
            ],
            out_specs=pl.BlockSpec((TB, TN), lambda i, j, k: (i, j)),
            scratch_shapes=scratch_shapes,
        ),
        compiler_params=pltpu.CompilerParams(
            dimension_semantics=("parallel", "parallel", "arbitrary"),
            vmem_limit_bytes=vmem_limit,
        ),
    )(x_p, W_p, x_p, diag_w, b2d)

    if pb or pd:
        return out_padded[:B, :D]
    return out_padded


def init_params(key, input_size, dtype=jnp.float32):
    """Deterministic init matching PyTorch reset_parameters (uniform +-stdv)."""
    stdv = 1.0 / math.sqrt(input_size)
    kw, kb = jax.random.split(key)
    W = jax.random.uniform(
        kw, (input_size, input_size), dtype=dtype, minval=-stdv, maxval=stdv
    )
    b = jax.random.uniform(kb, (input_size,), dtype=dtype, minval=-stdv, maxval=stdv)
    return W, b


def _reference(x, W, b):
    D = W.shape[0]
    m = jnp.ones((D, D), x.dtype) - jnp.eye(D, dtype=x.dtype)
    return x @ (W * m).T + b


if __name__ == "__main__":
    key = jax.random.PRNGKey(0)
    kx, kp, kx2, kp2 = jax.random.split(key, 4)

    # Small demo shape consistent with the module (2D input: batch x features).
    batch, input_size = 8, 32
    x = jax.random.normal(kx, (batch, input_size), dtype=jnp.float32)
    W, b = init_params(kp, input_size)

    z_h = feature_regression(x, W, b)
    z_h = jax.block_until_ready(z_h)
    ref = _reference(x, W, b)
    assert jnp.allclose(z_h, ref, atol=1e-5, rtol=1e-5), "mismatch vs reference (small)"

    # Second check: ragged D (padding path) + tiled K accumulation + 2-wide
    # parallel grid axes, still small.
    B2, D2 = 16, 200
    x2 = jax.random.normal(kx2, (B2, D2), dtype=jnp.float32)
    W2, b2 = init_params(kp2, D2)
    z2 = feature_regression(x2, W2, b2, tb=8, tn=128, tk=128)
    z2 = jax.block_until_ready(z2)
    ref2 = _reference(x2, W2, b2)
    assert jnp.allclose(z2, ref2, atol=1e-4, rtol=1e-4), "mismatch vs reference (tiled)"

    print("KERNEL_OK")
</pallas_src>

<mosaic_0001>
module attributes {stable_mosaic.version = 11 : i64} {
  func.func @kernel(%arg0: i32, %arg1: i32, %arg2: i32, %arg3: memref<8x128xf32, #tpu.memory_space<vmem>>, %arg4: memref<128x128xf32, #tpu.memory_space<vmem>>, %arg5: memref<8x128xf32, #tpu.memory_space<vmem>>, %arg6: memref<1x128xf32, #tpu.memory_space<vmem>>, %arg7: memref<1x128xf32, #tpu.memory_space<vmem>>, %arg8: memref<8x128xf32, #tpu.memory_space<vmem>>) attributes {dimension_semantics = [#tpu.dimension_semantics<parallel>, #tpu.dimension_semantics<parallel>, #tpu.dimension_semantics<arbitrary>], iteration_bounds = array<i64: 1, 1, 1>, scalar_prefetch = 0 : i64, scratch_operands = 0 : i64, tpu.core_type = #tpu.core_type<tc>, window_params = [{transform_indices = @transform_0, window_bounds = array<i64: 8, 128>}, {transform_indices = @transform_1, window_bounds = array<i64: 128, 128>}, {transform_indices = @transform_2, window_bounds = array<i64: 8, 128>}, {transform_indices = @transform_3, window_bounds = array<i64: 1, 128>}, {transform_indices = @transform_4, window_bounds = array<i64: 1, 128>}, {transform_indices = @transform_5, window_bounds = array<i64: 8, 128>}]} {
    %c0_i32 = arith.constant 0 : i32
    %0 = arith.cmpi eq, %arg2, %c0_i32 : i32
    %1 = arith.extui %0 : i1 to i32
    %c0_i32_0 = arith.constant 0 : i32
    %2 = arith.cmpi ne, %1, %c0_i32_0 : i32
    scf.if %2 {
      %cst_10 = arith.constant 0.000000e+00 : f32
      %12 = vector.broadcast %cst_10 : f32 to vector<8x128xf32>
      %c0_11 = arith.constant 0 : index
      %c0_12 = arith.constant 0 : index
      %13 = vector.load %arg8[%c0_11, %c0_12] : memref<8x128xf32, #tpu.memory_space<vmem>>, vector<8x128xf32>
      tpu.vector_store %arg8[%c0_11, %c0_12], %12 {strides = array<i32>} : memref<8x128xf32, #tpu.memory_space<vmem>>, vector<8x128xf32>,
    } else {
    }
    %c0 = arith.constant 0 : index
    %c0_1 = arith.constant 0 : index
    %3 = vector.load %arg3[%c0, %c0_1] : memref<8x128xf32, #tpu.memory_space<vmem>>, vector<8x128xf32>
    %c0_2 = arith.constant 0 : index
    %c0_3 = arith.constant 0 : index
    %4 = vector.load %arg4[%c0_2, %c0_3] : memref<128x128xf32, #tpu.memory_space<vmem>>, vector<128x128xf32>
    %c0_4 = arith.constant 0 : index
    %c0_5 = arith.constant 0 : index
    %5 = vector.load %arg8[%c0_4, %c0_5] : memref<8x128xf32, #tpu.memory_space<vmem>>, vector<8x128xf32>
    %cst = arith.constant dense<0.000000e+00> : vector<8x128xf32>
    %6 = tpu.matmul %3, %4, %cst {dimension_numbers = #tpu.dot_dimension_numbers<[1], [1], [0], [0], [0, 0, 1, 0], [], []>} : vector<8x128xf32>, vector<128x128xf32>, vector<8x128xf32> -> vector<8x128xf32>
    %7 = arith.addf %5, %6 : vector<8x128xf32>
    %c0_6 = arith.constant 0 : index
    %c0_7 = arith.constant 0 : index
    %8 = vector.load %arg8[%c0_6, %c0_7] : memref<8x128xf32, #tpu.memory_space<vmem>>, vector<8x128xf32>
    tpu.vector_store %arg8[%c0_6, %c0_7], %7 {strides = array<i32>} : memref<8x128xf32, #tpu.memory_space<vmem>>, vector<8x128xf32>,
    %c0_i32_8 = arith.constant 0 : i32
    %9 = arith.cmpi eq, %arg2, %c0_i32_8 : i32
    %10 = arith.extui %9 : i1 to i32
    %c0_i32_9 = arith.constant 0 : i32
    %11 = arith.cmpi ne, %10, %c0_i32_9 : i32
    scf.if %11 {
      %c0_10 = arith.constant 0 : index
      %c0_11 = arith.constant 0 : index
      %12 = vector.load %arg8[%c0_10, %c0_11] : memref<8x128xf32, #tpu.memory_space<vmem>>, vector<8x128xf32>
      %c0_12 = arith.constant 0 : index
      %c0_13 = arith.constant 0 : index
      %13 = vector.load %arg5[%c0_12, %c0_13] : memref<8x128xf32, #tpu.memory_space<vmem>>, vector<8x128xf32>
      %c0_14 = arith.constant 0 : index
      %c0_15 = arith.constant 0 : index
      %14 = vector.load %arg6[%c0_14, %c0_15] : memref<1x128xf32, #tpu.memory_space<vmem>>, vector<1x128xf32>
      %15 = vector.broadcast %14 : vector<1x128xf32> to vector<8x128xf32>
      %16 = arith.mulf %13, %15 : vector<8x128xf32>
      %17 = arith.subf %12, %16 : vector<8x128xf32>
      %c0_16 = arith.constant 0 : index
      %c0_17 = arith.constant 0 : index
      %18 = vector.load %arg7[%c0_16, %c0_17] : memref<1x128xf32, #tpu.memory_space<vmem>>, vector<1x128xf32>
      %19 = vector.broadcast %18 : vector<1x128xf32> to vector<8x128xf32>
      %20 = arith.addf %17, %19 : vector<8x128xf32>
      %c0_18 = arith.constant 0 : index
      %c0_19 = arith.constant 0 : index
      %21 = vector.load %arg8[%c0_18, %c0_19] : memref<8x128xf32, #tpu.memory_space<vmem>>, vector<8x128xf32>
      tpu.vector_store %arg8[%c0_18, %c0_19], %20 {strides = array<i32>} : memref<8x128xf32, #tpu.memory_space<vmem>>, vector<8x128xf32>,
    } else {
    }
    return
  }
  func.func @transform_0(%arg0: i32, %arg1: i32, %arg2: i32) -> (i32, i32) {
    %c0_i32 = arith.constant 0 : i32
    return %arg0, %arg2 : i32, i32
  }
  func.func @transform_1(%arg0: i32, %arg1: i32, %arg2: i32) -> (i32, i32) {
    %c0_i32 = arith.constant 0 : i32
    return %arg1, %arg2 : i32, i32
  }
  func.func @transform_2(%arg0: i32, %arg1: i32, %arg2: i32) -> (i32, i32) {
    %c0_i32 = arith.constant 0 : i32
    return %arg0, %arg1 : i32, i32
  }
  func.func @transform_3(%arg0: i32, %arg1: i32, %arg2: i32) -> (i32, i32) {
    %c0_i32 = arith.constant 0 : i32
    %c0_i32_0 = arith.constant 0 : i32
    return %c0_i32, %arg1 : i32, i32
  }
  func.func @transform_4(%arg0: i32, %arg1: i32, %arg2: i32) -> (i32, i32) {
    %c0_i32 = arith.constant 0 : i32
    %c0_i32_0 = arith.constant 0 : i32
    return %c0_i32, %arg1 : i32, i32
  }
  func.func @transform_5(%arg0: i32, %arg1: i32, %arg2: i32) -> (i32, i32) {
    %c0_i32 = arith.constant 0 : i32
    return %arg0, %arg1 : i32, i32
  }
}

</mosaic_0001>

<bundles_post_ra>
// kernel: tpu_custom_call.1
= control target key start
LH: loop header
LB: loop body
LE: loop exit
PB: predicated region body
PF: predicated region fallthrough
CT: control target
= control target key end

     0   :  { %10 = vsyncpa [#allocation3], 0  ;;  %s309_s0 = inlined_call_operand.hbm [shape: f32[8,128], index: 0, kind: input, shape index: {}]   ;;  %s310_s1 = inlined_call_operand.hbm [shape: f32[128,128], index: 1, kind: input, shape index: {}]   ;;  %s311_s2 = inlined_call_operand.hbm [shape: f32[8,128], index: 2, kind: input, shape index: {}]   ;;  %s312_s3 = inlined_call_operand.vmem [shape: f32[1,128], index: 3, kind: input, shape index: {}]   ;;  %s313_s4 = inlined_call_operand.vmem [shape: f32[1,128], index: 4, kind: input, shape index: {}]   ;;  %s314_s5 = inlined_call_operand.hbm [shape: f32[8,128], index: 5, kind: output, shape index: {}]  }
   0x1   :  { %11 = vsyncpa [#allocation6], 0  ;;  %s28_s20 = sshll.u32 %s310_s1, 4  ;;  %s29_s20 = int_to_ptr.hbm [resolvable:$true] %s28_s20 }
   0x2   :  { %12 = vsyncpa [#allocation4], 0  ;;  %s255_s21 = smov [#allocation5]   ;;  %s18_s25 = sshll.u32 %s309_s0, 4  ;;  %s19_s25 = int_to_ptr.hbm [resolvable:$true] %s18_s25 }
   0x3   :  { %s30_s22 = sshll.u32 %s255_s21, 4  ;;  %s256_s26 = smov 128   ;;  %s31_s22 = int_to_ptr.vmem [resolvable:$true] %s30_s22 }
   0x4   :  { %s257_s27 = smov 8   ;;  %s258_s28 = smov [#allocation2]  }
   0x5   :  { %36 = dma.hbm_to_vmem [thread:$0]  %s29_s20, 2048, %s31_s22, [#allocation6], %s256_s26, %s256_s26, %s257_s27  }
   0x6   :  { %s20_s29 = sshll.u32 %s258_s28, 4  ;;  %s42_s7 = sshll.u32 %s311_s2, 4  ;;  %s21_s29 = int_to_ptr.vmem [resolvable:$true] %s20_s29  ;;  %s43_s7 = int_to_ptr.hbm [resolvable:$true] %s42_s7 }
   0x7   :  { %23 = dma.hbm_to_vmem [thread:$0]  %s19_s25, 128, %s21_s29, [#allocation3]  }
   0x8   :  { %s259_s1 = smov [#allocation7]  }
   0x9   :  { %s44_s8 = sshll.u32 %s259_s1, 4  ;;  %s45_s8 = int_to_ptr.vmem [resolvable:$true] %s44_s8 }
   0xa   :  { %47 = dma.hbm_to_vmem [thread:$0]  %s43_s7, 128, %s45_s8, [#allocation6]  }
   0xb   :  { %249 = dma.done.wait [#allocation3], 128  }
   0xc   :  { %250 = vsyncadd [#allocation3], 4294967168 }
   0xd   :  { %251 = dma.done.wait [#allocation6], 2176  }
   0xe   :  { %252 = vsyncadd [#allocation6], 4294965120  ;;  %v85_v0 = vld [vmem:[#allocation5 + $0x78] sm:$0xff]  ;;  %v84_v1 = vld [vmem:[#allocation5 + $0x70] sm:$0xff]  ;;  %s260_s11 = smov [#allocation8]   ;;  %s133_s15 = sshll.u32 %s314_s5, 4  ;;  %s134_s15 = int_to_ptr.hbm [resolvable:$true] %s133_s15 }
   0xf   :  { %87 = vmatpush.xpose.msra.mxu0 %v85_v0  ;;  %v83_v2 = vld [vmem:[#allocation5 + $0x68] sm:$0xff]  ;;  %v82_v3 = vld [vmem:[#allocation5 + $0x60] sm:$0xff]  ;;  %v81_v4 = vld [vmem:[#allocation5 + $0x58] sm:$0xff]  ;;  %s131_s12 = sshll.u32 %s260_s11, 4  ;;  %s132_s12 = int_to_ptr.vmem [resolvable:$true] %s131_s12 }
  0x10   :  { %v80_v5 = vld [vmem:[#allocation5 + $0x50] sm:$0xff]  ;;  %v79_v6 = vld [vmem:[#allocation5 + $0x48] sm:$0xff]  ;;  %v78_v7 = vld [vmem:[#allocation5 + $0x40] sm:$0xff] }
  0x11   :  { %v77_v8 = vld [vmem:[#allocation5 + $0x38] sm:$0xff]  ;;  %v76_v9 = vld [vmem:[#allocation5 + $0x30] sm:$0xff]  ;;  %v75_v10 = vld [vmem:[#allocation5 + $0x28] sm:$0xff] }
  0x12   :  { %v74_v11 = vld [vmem:[#allocation5 + $0x20] sm:$0xff]  ;;  %v73_v12 = vld [vmem:[#allocation5 + $0x18] sm:$0xff]  ;;  %v72_v13 = vld [vmem:[#allocation5 + $0x10] sm:$0xff] }
  0x13   :  { %88 = vmatpush.xpose.msra.mxu0 %v84_v1  ;;  %v71_v14 = vld [vmem:[#allocation5 + $0x8] sm:$0xff]  ;;  %v70_v15 = vld [vmem:[#allocation5] sm:$0xff]  ;;  %v69_v16 = vld [vmem:[#allocation2] sm:$0xff] }
  0x14   :  { %v151_v17 = vld [vmem:[%s312_s3] ss:$0 sm:$0xff]  ;;  %v113_v18 = vld [vmem:[#allocation7] sm:$0xff] }
  0x15   :  { %v118_v19 = vmul.f32 %v151_v17, %v113_v18  ;;  %v152_v21 = vld [vmem:[%s313_s4] ss:$0 sm:$0xff] }
  0x17   :  { %89 = vmatpush.xpose.msra.mxu0 %v83_v2 }
  0x1b   :  { %90 = vmatpush.xpose.msra.mxu0 %v82_v3 }
  0x1f   :  { %91 = vmatpush.xpose.msra.mxu0 %v81_v4 }
  0x23   :  { %92 = vmatpush.xpose.msra.mxu0 %v80_v5 }
  0x27   :  { %93 = vmatpush.xpose.msra.mxu0 %v79_v6 }
  0x2b   :  { %94 = vmatpush.xpose.msra.mxu0 %v78_v7 }
  0x2f   :  { %95 = vmatpush.xpose.msra.mxu0 %v77_v8 }
  0x33   :  { %96 = vmatpush.xpose.msra.mxu0 %v76_v9 }
  0x37   :  { %97 = vmatpush.xpose.msra.mxu0 %v75_v10 }
  0x3b   :  { %98 = vmatpush.xpose.msra.mxu0 %v74_v11 }
  0x3f   :  { %99 = vmatpush.xpose.msra.mxu0 %v73_v12 }
  0x43   :  { %100 = vmatpush.xpose.msra.mxu0 %v72_v13 }
  0x47   :  { %101 = vmatpush.xpose.msra.mxu0 %v71_v14 }
  0x4b   :  { %102 = vmatpush.xpose.msra.mxu0 %v70_v15 }
  0x4e   :  { %103 = vmatmul.f32.vlgmr.msra.gmra.mxu0 %v69_v16 }
  0xcb   :  { %v104_v20 = vpop.f32.mrf.mxu0 }
  0xcc   :  { %v119_v22 = vsub.f32 %v104_v20, %v118_v19 }
  0xce   :  { %v124_v23 = vadd.f32 %v152_v21, %v119_v22 }
  0xd0   :  { %125 = vst [vmem:[#allocation8] sm:$0xff] %v124_v23 }
  0xd1   :  { %136 = dma.vmem_to_hbm [thread:$0]  %s132_s12, 128, %s134_s15, [#allocation4]  }
  0xd2   :  { %253 = dma.done.wait [#allocation4], 128  }
  0xd3   :  { %254 = vsyncadd [#allocation4], 4294967168 }
  0xd4   :  { %141 = vsyncpa [#allocation3], 1 }
  0xd5   :  { %142 = vsyncpa [#allocation6], 1 }
  0xd6   :  { %143 = vsyncpa [#allocation4], 1 }

</bundles_post_ra>
